<compile_context>
chip_gen: v7x
topology: tpu7x:2x2x1
jax: 0.10.0
libtpu: 0.0.40
codegen_flags: <defaults>
</compile_context>

<pallas_src>
import math

import jax
import jax.numpy as jnp
from jax.experimental import pallas as pl
from jax.experimental.pallas import tpu as pltpu


_LANE = 128
_TILE_VMEM_BUDGET = 28 * 1024 * 1024   # per-step working-set target (all gens)
_VMEM_LIMIT_BYTES = 44 * 1024 * 1024   # scoped limit; fits v7x 64 MiB physical


# ----------------------------- Pallas kernel --------------------------------

def _conv_mlp_kernel(x_ref, w1_ref, b1_ref, w2_ref, b2_ref, o_ref):
    # x block: (Cin, ts) channel-major, spatial along lanes; bf16 operands.
    x = x_ref[...]

    # fc1: (hidden, Cin) @ (Cin, ts) on the MXU with f32 accumulation.
    h = jnp.dot(w1_ref[...], x, preferred_element_type=jnp.float32)

    # norm = Identity (default); bias + ReLU in f32, then back to the compute
    # dtype so the (hidden, ts) intermediate feeding the second matmul is
    # half-size (less spill vst/vld traffic, native-bf16 second MXU pass).
    h = jnp.maximum(h + b1_ref[...], 0.0).astype(x.dtype)

    # fc2: (Cout, hidden) @ (hidden, ts), f32 accumulate, add bias, store.
    y = jnp.dot(w2_ref[...], h, preferred_element_type=jnp.float32) + b2_ref[...]

    o_ref[...] = y.astype(o_ref.dtype)


# ------------------------------ tiling helpers -------------------------------

def _round_up(x, m):
    return ((x + m - 1) // m) * m


def _round_down(x, m):
    return (x // m) * m


def _pick_tile_s(S, B, Cin, hidden, Cout, op_bytes, out_bytes, requested):
    """Largest lane-dense spatial tile that fits the per-step VMEM budget."""
    # Grid-invariant residency: single-buffered bf16 weights + f32 biases.
    fixed = (hidden * Cin + Cout * hidden) * op_bytes + (hidden + Cout) * 4
    # Per-spatial-column bytes: double-buffered x and out tiles, the f32
    # pre-activation + bf16 post-activation intermediate, the f32 result tile.
    per_col = (2 * Cin * op_bytes + 2 * Cout * out_bytes
               + hidden * (4 + op_bytes) + Cout * 4)
    avail = max(_TILE_VMEM_BUDGET - fixed, per_col * _LANE)
    ts = _round_down(avail // per_col, _LANE)

    # Keep several grid steps in flight so the software pipeline overlaps DMA
    # with compute and the v7x megacore has work to shard.
    steps_target = max(1, (8 + B - 1) // B)
    ts_cap = max(_LANE, _round_up((S + steps_target - 1) // steps_target, _LANE))

    ts = min(ts, ts_cap, int(requested), _round_up(S, _LANE))
    return max(_LANE, _round_down(ts, _LANE))


# --------------------------------- wrapper -----------------------------------

def conv_mlp_forward(x_nchw, params, *, tile_s=2048, compute_dtype=jnp.bfloat16):
    """Fused ConvMlp forward.

    x_nchw: (B, Cin, H, W)   (PyTorch NCHW layout, any float dtype)
    params: dict with
        w1: (hidden, Cin)   b1: (hidden, 1)
        w2: (Cout, hidden)  b2: (Cout, 1)
    """
    B, Cin, H, W = x_nchw.shape
    S = H * W

    w1, b1 = params["w1"], params["b1"]
    w2, b2 = params["w2"], params["b2"]
    hidden = w1.shape[0]
    Cout = w2.shape[0]
    out_dtype = x_nchw.dtype

    # Cast ONCE in the wrapper: bf16 MXU operands, f32 biases.
    x3 = x_nchw.reshape(B, Cin, S).astype(compute_dtype)   # free reshape
    w1c = w1.astype(compute_dtype)
    w2c = w2.astype(compute_dtype)
    b1f = b1.astype(jnp.float32)
    b2f = b2.astype(jnp.float32)

    op_bytes = jnp.dtype(compute_dtype).itemsize
    out_bytes = jnp.dtype(out_dtype).itemsize
    ts = _pick_tile_s(S, B, Cin, hidden, Cout, op_bytes, out_bytes, tile_s)

    # Ragged last spatial tile is handled by Pallas with a masked edge store
    # only on that tile; no jnp.pad / output slice (no extra HBM passes).
    grid = (B, pl.cdiv(S, ts))

    const_map = lambda b, j: (0, 0)

    out = pl.pallas_call(
        _conv_mlp_kernel,
        out_shape=jax.ShapeDtypeStruct((B, Cout, S), out_dtype),
        grid_spec=pltpu.PrefetchScalarGridSpec(
            num_scalar_prefetch=0,
            grid=grid,
            in_specs=[
                # x tile: batch dim squeezed, (Cin, ts) lane-dense block.
                pl.BlockSpec((None, Cin, ts), lambda b, j: (b, 0, j)),
                # Weights / biases: full arrays, VMEM-resident, constant index
                # maps -> single-buffered (never re-DMA'd across steps).
                pl.BlockSpec((hidden, Cin), const_map, pipeline_mode=pl.Buffered(1)),
                pl.BlockSpec((hidden, 1), const_map, pipeline_mode=pl.Buffered(1)),
                pl.BlockSpec((Cout, hidden), const_map, pipeline_mode=pl.Buffered(1)),
                pl.BlockSpec((Cout, 1), const_map, pipeline_mode=pl.Buffered(1)),
            ],
            out_specs=pl.BlockSpec((None, Cout, ts), lambda b, j: (b, 0, j)),
        ),
        compiler_params=pltpu.CompilerParams(
            dimension_semantics=("parallel", "parallel"),
            vmem_limit_bytes=_VMEM_LIMIT_BYTES),
    )(x3, w1c, b1f, w2c, b2f)

    return out.reshape(B, Cout, H, W)


# ----------------------- parameter setup (plain JAX glue) -------------------

def build_params(key, *, in_features, hidden_features=None, out_features=None):
    """Deterministic Conv2d(k=1) weights, matching PyTorch init ranges."""
    hidden_features = hidden_features or in_features
    out_features = out_features or in_features
    k1, k2, k3, k4 = jax.random.split(key, 4)
    s1 = 1.0 / math.sqrt(in_features)
    s2 = 1.0 / math.sqrt(hidden_features)
    w1 = jax.random.uniform(k1, (hidden_features, in_features), jnp.float32, -s1, s1)
    b1 = jax.random.uniform(k2, (hidden_features, 1), jnp.float32, -s1, s1)
    w2 = jax.random.uniform(k3, (out_features, hidden_features), jnp.float32, -s2, s2)
    b2 = jax.random.uniform(k4, (out_features, 1), jnp.float32, -s2, s2)
    return dict(w1=w1, b1=b1, w2=w2, b2=b2)


# ------------------------- pure-JAX reference (check) -----------------------

def reference_forward(x_nchw, p, compute_dtype=jnp.bfloat16):
    """Reference using the same bf16 operand rounding as the kernel."""
    B, Cin, H, W = x_nchw.shape
    f32 = jnp.float32
    x = x_nchw.reshape(B, Cin, H * W).astype(compute_dtype).astype(f32)
    w1 = p["w1"].astype(compute_dtype).astype(f32)
    w2 = p["w2"].astype(compute_dtype).astype(f32)
    h = jnp.einsum("oc,bcs->bos", w1, x) + p["b1"][None].astype(f32)
    h = jnp.maximum(h, 0.0).astype(compute_dtype).astype(f32)
    y = jnp.einsum("oc,bcs->bos", w2, h) + p["b2"][None].astype(f32)
    return y.reshape(B, -1, H, W).astype(x_nchw.dtype)


# ------------------------------------ main -----------------------------------

if __name__ == "__main__":
    key = jax.random.PRNGKey(0)
    kx, kp = jax.random.split(key)

    # Small shapes consistent with the module: NCHW input.
    B, Cin, H, W = 2, 32, 16, 16
    hidden_features = 64
    out_features = 32

    x = jax.random.normal(kx, (B, Cin, H, W), dtype=jnp.float32)
    params = build_params(kp, in_features=Cin,
                          hidden_features=hidden_features,
                          out_features=out_features)

    out = conv_mlp_forward(x, params, tile_s=2048)
    out = jax.block_until_ready(out)

    ref = reference_forward(x, params)
    assert out.shape == (B, out_features, H, W)
    # bf16 MXU operands -> looser tolerance than the f32 version.
    assert jnp.allclose(out, ref, atol=2e-2, rtol=2e-2), "mismatch vs reference"

    print("KERNEL_OK")
</pallas_src>

<mosaic_0001>
module attributes {stable_mosaic.version = 11 : i64} {
  func.func @_conv_mlp_kernel(%arg0: i32, %arg1: i32, %arg2: memref<1x32x128xbf16, #tpu.memory_space<vmem>>, %arg3: memref<64x32xbf16, #tpu.memory_space<vmem>>, %arg4: memref<64x1xf32, #tpu.memory_space<vmem>>, %arg5: memref<32x64xbf16, #tpu.memory_space<vmem>>, %arg6: memref<32x1xf32, #tpu.memory_space<vmem>>, %arg7: memref<1x32x128xf32, #tpu.memory_space<vmem>>) attributes {dimension_semantics = [#tpu.dimension_semantics<parallel>, #tpu.dimension_semantics<parallel>], iteration_bounds = array<i64: 2, 2>, scalar_prefetch = 0 : i64, scratch_operands = 0 : i64, tpu.core_type = #tpu.core_type<tc>, window_params = [{transform_indices = @transform_0, window_bounds = array<i64: 1, 32, 128>}, {pipeline_mode = #tpu.pipeline_mode<synchronous>, transform_indices = @transform_1, window_bounds = array<i64: 64, 32>}, {pipeline_mode = #tpu.pipeline_mode<synchronous>, transform_indices = @transform_2, window_bounds = array<i64: 64, 1>}, {pipeline_mode = #tpu.pipeline_mode<synchronous>, transform_indices = @transform_3, window_bounds = array<i64: 32, 64>}, {pipeline_mode = #tpu.pipeline_mode<synchronous>, transform_indices = @transform_4, window_bounds = array<i64: 32, 1>}, {transform_indices = @transform_5, window_bounds = array<i64: 1, 32, 128>}]} {
    %c0 = arith.constant 0 : index
    %c0_0 = arith.constant 0 : index
    %c0_1 = arith.constant 0 : index
    %0 = vector.load %arg2[%c0, %c0_0, %c0_1] : memref<1x32x128xbf16, #tpu.memory_space<vmem>>, vector<1x32x128xbf16>
    %1 = vector.shape_cast %0 : vector<1x32x128xbf16> to vector<32x128xbf16>
    %c0_2 = arith.constant 0 : index
    %c0_3 = arith.constant 0 : index
    %2 = vector.load %arg3[%c0_2, %c0_3] : memref<64x32xbf16, #tpu.memory_space<vmem>>, vector<64x32xbf16>
    %cst = arith.constant dense<0.000000e+00> : vector<64x128xf32>
    %3 = tpu.matmul %2, %1, %cst {dimension_numbers = #tpu.dot_dimension_numbers<[1], [0], [0], [1], [0, 0, 1, 1], [], []>} : vector<64x32xbf16>, vector<32x128xbf16>, vector<64x128xf32> -> vector<64x128xf32>
    %c0_4 = arith.constant 0 : index
    %c0_5 = arith.constant 0 : index
    %4 = vector.load %arg4[%c0_4, %c0_5] : memref<64x1xf32, #tpu.memory_space<vmem>>, vector<64x1xf32>
    %5 = vector.broadcast %4 : vector<64x1xf32> to vector<64x128xf32>
    %6 = arith.addf %3, %5 : vector<64x128xf32>
    %cst_6 = arith.constant 0.000000e+00 : f32
    %7 = vector.broadcast %cst_6 : f32 to vector<64x128xf32>
    %8 = arith.maximumf %6, %7 : vector<64x128xf32>
    %9 = arith.truncf %8 : vector<64x128xf32> to vector<64x128xbf16>
    %c0_7 = arith.constant 0 : index
    %c0_8 = arith.constant 0 : index
    %10 = vector.load %arg5[%c0_7, %c0_8] : memref<32x64xbf16, #tpu.memory_space<vmem>>, vector<32x64xbf16>
    %cst_9 = arith.constant dense<0.000000e+00> : vector<32x128xf32>
    %11 = tpu.matmul %10, %9, %cst_9 {dimension_numbers = #tpu.dot_dimension_numbers<[1], [0], [0], [1], [0, 0, 1, 1], [], []>} : vector<32x64xbf16>, vector<64x128xbf16>, vector<32x128xf32> -> vector<32x128xf32>
    %c0_10 = arith.constant 0 : index
    %c0_11 = arith.constant 0 : index
    %12 = vector.load %arg6[%c0_10, %c0_11] : memref<32x1xf32, #tpu.memory_space<vmem>>, vector<32x1xf32>
    %13 = vector.broadcast %12 : vector<32x1xf32> to vector<32x128xf32>
    %14 = arith.addf %11, %13 : vector<32x128xf32>
    %c0_12 = arith.constant 0 : index
    %c0_13 = arith.constant 0 : index
    %c0_14 = arith.constant 0 : index
    %15 = vector.load %arg7[%c0_12, %c0_13, %c0_14] : memref<1x32x128xf32, #tpu.memory_space<vmem>>, vector<1x32x128xf32>
    %16 = vector.shape_cast %15 : vector<1x32x128xf32> to vector<32x128xf32>
    %17 = vector.shape_cast %14 : vector<32x128xf32> to vector<1x32x128xf32>
    tpu.vector_store %arg7[%c0_12, %c0_13, %c0_14], %17 {strides = array<i32>} : memref<1x32x128xf32, #tpu.memory_space<vmem>>, vector<1x32x128xf32>,
    return
  }
  func.func @transform_0(%arg0: i32, %arg1: i32) -> (i32, i32, i32) {
    %c0_i32 = arith.constant 0 : i32
    %c0_i32_0 = arith.constant 0 : i32
    return %arg0, %c0_i32, %arg1 : i32, i32, i32
  }
  func.func @transform_1(%arg0: i32, %arg1: i32) -> (i32, i32) {
    %c0_i32 = arith.constant 0 : i32
    %c0_i32_0 = arith.constant 0 : i32
    %c0_i32_1 = arith.constant 0 : i32
    return %c0_i32, %c0_i32_0 : i32, i32
  }
  func.func @transform_2(%arg0: i32, %arg1: i32) -> (i32, i32) {
    %c0_i32 = arith.constant 0 : i32
    %c0_i32_0 = arith.constant 0 : i32
    %c0_i32_1 = arith.constant 0 : i32
    return %c0_i32, %c0_i32_0 : i32, i32
  }
  func.func @transform_3(%arg0: i32, %arg1: i32) -> (i32, i32) {
    %c0_i32 = arith.constant 0 : i32
    %c0_i32_0 = arith.constant 0 : i32
    %c0_i32_1 = arith.constant 0 : i32
    return %c0_i32, %c0_i32_0 : i32, i32
  }
  func.func @transform_4(%arg0: i32, %arg1: i32) -> (i32, i32) {
    %c0_i32 = arith.constant 0 : i32
    %c0_i32_0 = arith.constant 0 : i32
    %c0_i32_1 = arith.constant 0 : i32
    return %c0_i32, %c0_i32_0 : i32, i32
  }
  func.func @transform_5(%arg0: i32, %arg1: i32) -> (i32, i32, i32) {
    %c0_i32 = arith.constant 0 : i32
    %c0_i32_0 = arith.constant 0 : i32
    return %arg0, %c0_i32, %arg1 : i32, i32, i32
  }
}

</mosaic_0001>

<bundles_post_ra>
// kernel: tpu_custom_call.1
= control target key start
LH: loop header
LB: loop body
LE: loop exit
PB: predicated region body
PF: predicated region fallthrough
CT: control target
= control target key end

     0   :  { %10 = vsyncpa [#allocation4], 0  ;;  %s1165_s0 = inlined_call_operand.vmem [shape: bf16[2,32,256], index: 0, kind: input, shape index: {}]   ;;  %s1166_s1 = inlined_call_operand.vmem [shape: bf16[64,32], index: 1, kind: input, shape index: {}]   ;;  %s1167_s2 = inlined_call_operand.vmem [shape: f32[64,1], index: 2, kind: input, shape index: {}]   ;;  %s1168_s3 = inlined_call_operand.vmem [shape: bf16[32,64], index: 3, kind: input, shape index: {}]   ;;  %s1169_s4 = inlined_call_operand.vmem [shape: f32[32,1], index: 4, kind: input, shape index: {}]   ;;  %s1170_s5 = inlined_call_operand.hbm [shape: f32[2,32,256], index: 5, kind: output, shape index: {}]  }
   0x1   :  { %12 = vsyncpa [#allocation4 + $0x1], 0  ;;  %s954_s18 = smov 0   ;;  %s956_s19 = smov 0  }
   0x2   :  { %s958_s20 = smov 0   ;;  %s960_s21 = smov 0  }
   0x3   :  { %s962_s22 = smov 0   ;;  %s964_s23 = smov 0  }
   0x4   :  { %s966_s24 = smov 0   ;;  %s968_s25 = smov 0  }
   0x5 LB: > { %s673_s26 = sadd.s32 4294967295, %s917_s25   ;;  %s674_s27 = sadd.s32 4294967294, %s917_s25   ;;  %s917_s25 = sphi %s968_s25, %s18_s25   ;;  %s913_s24 = sphi %s966_s24, %s1180_s24   ;;  %s909_s23 = sphi %s964_s23, %s1179_s23   ;;  %s905_s22 = sphi %s962_s22, %s1178_s22   ;;  %s901_s21 = sphi %s960_s21, %s1177_s21   ;;  %s897_s20 = sphi %s958_s20, %s1176_s20   ;;  %s893_s19 = sphi %s956_s19, %s1175_s19   ;;  %s889_s18 = sphi %s954_s18, %s1174_s18  }
   0x6   : > { %s27_s28 = sadd.s32 1, %s909_s23  ;;  %s30_s29 = sadd.s32 1, %s913_s24 }
   0x7   : > { %p28_p0 = scmp.ge.s32.totalorder %s27_s28, 2  ;;  %p46_p1 = scmp.ne.s32.totalorder %s897_s20, %s893_s19 }
   0x8   : > { %p47_p2 = scmp.eq.s32.totalorder %s917_s25, 0  ;;  %p162_p5 = scmp.eq.s32.totalorder %s673_s26, 3 }
   0x9   : > { %s1182_s28 = smov (%p28_p0, %s27_s28), 0  ;;  %s1184_s29 = smov (!%p28_p0, %s30_s29), %s913_s24 }
   0xa   : > { %s35_s30 = ssub.s32 %s909_s23, %s1182_s28  ;;  %p1006_p3 = por %p47_p2, %p46_p1 }
   0xb   : > { %p32_p4 = scmp.ge.s32.totalorder %s1184_s29, 2  ;;  %p167_p6 = scmp.ne.s32.totalorder %s893_s19, %s889_s18 }
   0xc   : > { %p168_p7 = scmp.eq.s32.totalorder %s674_s27, 3  ;;  %p1014_p8 = por %p162_p5, %p46_p1 }
   0xd   : > { %s1186_s29 = smov (%p32_p4, %s1184_s29), 0  ;;  %s39_s11 = sadd.s32 1, %s897_s20 }
   0xe   : > { %p1018_p9 = por %p168_p7, %p167_p6  ;;  %s34_s9 = ssub.s32 %s913_s24, %s1186_s29 }
   0xf   : > { %s36_s10 = sor.u32 %s35_s30, %s34_s9  ;;  %p676_p11 = scmp.ge.s32.totalorder %s917_s25, 4 }
  0x10   : > { %p37_p10 = scmp.eq.s32.totalorder %s36_s10, 0 }
  0x11   : > { %196 = sbr.rel (%p676_p11) target bundleno = 32 (0x20), region = 32 }
  0x12   : > { %s1026_s12 = scalar_select %p37_p10, %s897_s20, %s39_s11  }
  0x18   : > { %199 = sbr.rel (!%p1006_p3) target bundleno = 32 (0x20), region = 36  ;;  %s201_s13 = sand.u32 (%p1006_p3), 1, %s897_s20  }
  0x19   : > { %s678_s14 = sshll.u32 (%p1006_p3), %s913_s24, 3  ;;  %s677_s15 = sshll.u32 (%p1006_p3), %s201_s13, 4 }
  0x1a   : > { %s205_s16 = sadd.s32 (%p1006_p3), %s909_s23, %s678_s14  ;;  %s203_s9 = scalar_lea.vmem (%p1006_p3), [#allocation2], %s677_s15 }
  0x1b   : > { %s679_s17 = sshll.u32 (%p1006_p3), %s205_s16, 2 }
  0x1c   : > { %s207_s30 = scalar_lea.vmem (%p1006_p3), %s1165_s0, %s679_s17 }
  0x1d   : > { %v223_v0 = vld [vmem:[%s207_s30] sm:$0xf] (%p1006_p3)  ;;  %v225_v1 = vld [vmem:[%s207_s30 + $0x8] sm:$0xf] (%p1006_p3)  ;;  %v227_v2 = vld [vmem:[%s207_s30 + $0x10] sm:$0xf] (%p1006_p3) }
  0x1e   : > { %224 = vst [vmem:[%s203_s9] sm:$0xf] (%p1006_p3), %v223_v0  ;;  %226 = vst [vmem:[%s203_s9 + $0x4] sm:$0xf] (%p1006_p3), %v225_v1  ;;  %v229_v3 = vld [vmem:[%s207_s30 + $0x18] sm:$0xf] (%p1006_p3) }
  0x1f   : > { %228 = vst [vmem:[%s203_s9 + $0x8] sm:$0xf] %v227_v2  ;;  %230 = vst [vmem:[%s203_s9 + $0xc] sm:$0xf] %v229_v3 }
  0x20 PF: > { %p680_p12 = scmp.ge.s32.totalorder %s917_s25, 1  ;;  %p260_p13 = scmp.lt.s32.totalorder %s917_s25, 5 }
  0x22   : > { %p261_p0 = pnand %p680_p12, %p260_p13 }
  0x23   : > { %s1040_s6 = sand.u32 (!%p261_p0), 1, %s893_s19   ;;  %v817_v4 = vld [vmem:[%s1166_s1] sm:$0xff] (!%p261_p0)   ;;  %vm387_vm0 = vcmask (!%p261_p0), 261120   ;;  %v919_v7 = vmov (!%p261_p0), 0   ;;  %v309_v9 = vld [vmem:[%s1167_s2 + $0x10] sm:$0xff] (!%p261_p0)  ;;  %v308_v10 = vld [vmem:[%s1167_s2 + $0x8] sm:$0xff] (!%p261_p0) }
  0x24   : > { %264 = sbr.rel (%p261_p0) target bundleno = 517 (0x205), region = 77  ;;  %s681_s13 = sshll.u32 (!%p261_p0), %s1040_s6, 4  ;;  %718 = vmatprep.mubr.msk.bf16.mxu0 (!%p261_p0), %vm387_vm0, %v817_v4  ;;  %813 = vset.pattern.permute.xlu0 (!%p261_p0), %v919_v7  ;;  %v307_v8 = vld [vmem:[%s1167_s2] sm:$0xff] (!%p261_p0)  ;;  %v818_v11 = vld [vmem:[%s1166_s1 + $0x8] sm:$0xff] (!%p261_p0)   ;;  %v310_v12 = vld [vmem:[%s1167_s2 + $0x18] sm:$0xff] (!%p261_p0)  ;;  %vm515_vm1 = vcmask (!%p261_p0), 523264  }
  0x25   : > { %s269_s14 = scalar_lea.vmem (!%p261_p0), [#allocation2], %s681_s13  ;;  %814 = vset.pattern.permute.xlu1 (!%p261_p0), %v919_v7  ;;  %317 = vperm.xlu0 (!%p261_p0), %813, %v307_v8   ;;  %v819_v13 = vld [vmem:[%s1166_s1 + $0x10] sm:$0xff] (!%p261_p0)   ;;  %v311_v14 = vld [vmem:[%s1167_s2 + $0x20] sm:$0xff] (!%p261_p0)  ;;  %v312_v15 = vld [vmem:[%s1167_s2 + $0x28] sm:$0xff] (!%p261_p0)  ;;  %s698_s16 = sshll.u32 (!%p261_p0), %s905_s22, 3 }
  0x26   : > { %v815_v5 = vld [vmem:[%s269_s14] sm:$0xff] (!%p261_p0)   ;;  %v816_v6 = vld [vmem:[%s269_s14 + $0x8] sm:$0xff] (!%p261_p0)   ;;  %327 = vperm.xlu1 (!%p261_p0), %814, %v309_v9   ;;  %s682_s17 = sshll.u32 (!%p261_p0), %s1040_s6, 5  ;;  %s587_s26 = sadd.s32 (!%p261_p0), %s901_s21, %s698_s16 }
  0x27   : > { %714 = vmatprep.subr.bf16.mxu0 (!%p261_p0), %v815_v5  ;;  %v313_v16 = vld [vmem:[%s1167_s2 + $0x30] sm:$0xff] (!%p261_p0)  ;;  %v820_v17 = vld [vmem:[%s1166_s1 + $0x18] sm:$0xff] (!%p261_p0)   ;;  %v481_v19 = vld [vmem:[%s1169_s4] sm:$0xff] (!%p261_p0)  ;;  %s293_s27 = scalar_lea.vmem (!%p261_p0), [#allocation3], %s682_s17  ;;  %s699_s9 = sshll.u32 (!%p261_p0), %s587_s26, 7 }
  0x28   : > { %715 = vmatpush3.bf16.msra.mxu0 (!%p261_p0), %v815_v5  ;;  %v314_v18 = vld [vmem:[%s1167_s2 + $0x38] sm:$0xff] (!%p261_p0)  ;;  %v482_v20 = vld [vmem:[%s1169_s4 + $0x8] sm:$0xff] (!%p261_p0)  ;;  %v483_v21 = vld [vmem:[%s1169_s4 + $0x10] sm:$0xff] (!%p261_p0)  ;;  %s590_s30 = sshll.u32 (!%p261_p0), %s293_s27, 4  ;;  %s1111_s10 = scalar_lea.hbm (!%p261_p0), %s1170_s5, %s699_s9  ;;  %s1106_s30 = int_to_ptr.vmem [resolvable:$true] %s590_s30 }
  0x29   : > { %716 = vmatprep.subr.bf16.mxu0 (!%p261_p0), %v816_v6  ;;  %322 = vperm.xlu0 (!%p261_p0), %813, %v308_v10   ;;  %v484_v22 = vld [vmem:[%s1169_s4 + $0x18] sm:$0xff] (!%p261_p0)  ;;  %v821_v23 = vld [vmem:[%s1168_s3] sm:$0xff] (!%p261_p0)   ;;  %v822_v60 = vld [vmem:[%s1168_s3 + $0x8] sm:$0xff] (!%p261_p0)   ;;  %s576_s11 = scalar_lea.sflag (!%p261_p0), [#allocation4], %s1040_s6  ;;  %s823_s13 = scalar_lea.vmem (!%p261_p0), %s1106_s30, 512 }
  0x2a   : > { %332 = vperm.xlu1 (!%p261_p0), %814, %v310_v12   ;;  %734 = vmatprep.mubr.msk.bf16.mxu1 (!%p261_p0), %vm515_vm1, %v821_v23  ;;  %p824_p1 = scmp.ne.s32.totalorder (!%p261_p0), %s1106_s30, %s823_s13  ;;  %s920_s14 = smov (!%p261_p0), [#allocation3]  }
  0x2b   : > { %s827_s15 = sshll.u32 %s920_s14, 4  ;;  %s828_s15 = int_to_ptr.vmem [resolvable:$false] %s827_s15 }
  0x2c   : > { %717 = vmatpush3.bf16.msra.mxu0 %v816_v6  ;;  %p825_p2 = pnand %p824_p1, %p1014_p8  ;;  %s829_s16 = scalar_lea.vmem %s828_s15, 1024 }
  0x2d   : > { %337 = vperm.xlu0 %813, %v311_v14   ;;  %p830_p4 = scmp.lt.s32.totalorder %s1106_s30, %s828_s15  ;;  %p831_p5 = scmp.lt.s32.totalorder %s829_s16, %s823_s13 }
  0x2e   : > { %342 = vperm.xlu1 %814, %v312_v15   ;;  %p826_p3 = pneg %p825_p2 }
  0x2f   : > { %719 = vmatmul.mubr.msk.bf16.vlgmr.msra.gmra.mrb[0].mxu0 %vm387_vm0, %v818_v11  ;;  %p832_p6 = por %p831_p5, %p830_p4 }
  0x30   : > { %722 = vmatprep.mubr.msk.bf16.mxu0 %vm387_vm0, %v819_v13 }
  0x31   : > { %347 = vperm.xlu0 %813, %v313_v16   ;;  %p833_p7 = pnand %p832_p6, %p826_p3 }
  0x32   : > { %352 = vperm.xlu1 %814, %v314_v18  }
  0x35   : > { %487 = vperm.xlu0 %813, %v481_v19  }
  0x36   : > { %492 = vperm.xlu1 %814, %v482_v20  }
  0x37   : > { %723 = vmatmul.mubr.msk.bf16.gmra.mrb[4].mxu0 %vm387_vm0, %v820_v17 }
  0x39   : > { %497 = vperm.xlu0 %813, %v483_v21  }
  0x3a   : > { %502 = vperm.xlu1 %814, %v484_v22  }
  0xa4   : > { %v318_v24 = vpop.permute.xlu0 %317 }
  0xa5   : > { %v328_v25 = vpop.permute.xlu1 %327 }
  0xa8   : > { %v323_v26 = vpop.permute.xlu0 %322 }
  0xa9   : > { %v333_v27 = vpop.permute.xlu1 %332 }
  0xac   : > { %v338_v31 = vpop.permute.xlu0 %337 }
  0xad   : > { %v343_v36 = vpop.permute.xlu1 %342 }
  0xb0   : > { %v348_v43 = vpop.permute.xlu0 %347 }
  0xb1   : > { %v353_v48 = vpop.permute.xlu1 %352 }
  0xb4   : > { %v488_v61 = vpop.permute.xlu0 %487 }
  0xb5   : > { %v493_v62 = vpop.permute.xlu1 %492 }
  0xb8   : > { %v498_v63 = vpop.permute.xlu0 %497 }
  0xb9   : > { %v503_v3 = vpop.permute.xlu1 %502 }
 0x102   : > { %v720_v28 = vpop.f32.mrb[0].mxu0 }
 0x103   : > { %v443_v29 = vadd.f32 %v720_v28, %v328_v25  ;;  %v434_v30 = vpop.f32.mrb[1].mxu0 }
 0x104   : > { %v435_v32 = vadd.f32 %v434_v30, %v318_v24  ;;  %v721_v33 = vpop.f32.mrb[2].mxu0 }
 0x105   : > { %v446_v34 = vadd.f32 %v721_v33, %v333_v27  ;;  %v437_v35 = vpop.f32.mrb[3].mxu0  ;;  %v467_v38 = vmax.f32 %v443_v29, 0.0 }
 0x106   : > { %v438_v37 = vadd.f32 %v437_v35, %v323_v26  ;;  %v465_v40 = vmax.f32 %v435_v32, 0.0 }
 0x107   : > { %v468_v39 = vmax.f32 %v446_v34, 0.0 }
 0x108   : > { %v466_v41 = vmax.f32 %v438_v37, 0.0 }
 0x109   : > { %v474_v42 = vpack.c.bf16 %v468_v39, %v467_v38 }
 0x10a   : > { %v724_v44 = vpop.f32.mrb[4].mxu0  ;;  %v473_v45 = vpack.c.bf16 %v466_v41, %v465_v40 }
 0x10b   : > { %v459_v46 = vadd.f32 %v724_v44, %v348_v43  ;;  %v450_v47 = vpop.f32.mrb[5].mxu0 }
 0x10c   : > { %v451_v49 = vadd.f32 %v450_v47, %v338_v31  ;;  %v725_v50 = vpop.f32.mrb[6].mxu0  ;;  %726 = vmatprep.subr.bf16.mxu1 %v473_v45 }
 0x10d   : > { %v462_v51 = vadd.f32 %v725_v50, %v353_v48  ;;  %v453_v52 = vpop.f32.mrb[7].mxu0  ;;  %727 = vmatpush3.bf16.msra.mxu1 %v473_v45  ;;  %v471_v54 = vmax.f32 %v459_v46, 0.0 }
 0x10e   : > { %v454_v53 = vadd.f32 %v453_v52, %v343_v36  ;;  %728 = vmatprep.subr.bf16.mxu1 %v474_v42  ;;  %v469_v56 = vmax.f32 %v451_v49, 0.0 }
 0x10f   : > { %v472_v55 = vmax.f32 %v462_v51, 0.0 }
 0x110   : > { %v470_v57 = vmax.f32 %v454_v53, 0.0 }
 0x111   : > { %v476_v58 = vpack.c.bf16 %v472_v55, %v471_v54  ;;  %729 = vmatpush3.bf16.msra.mxu1 %v474_v42 }
 0x112   : > { %v475_v59 = vpack.c.bf16 %v470_v57, %v469_v56 }
 0x114   : > { %730 = vmatprep.subr.bf16.mxu1 %v475_v59 }
 0x115   : > { %731 = vmatpush3.bf16.msra.mxu1 %v475_v59 }
 0x116   : > { %732 = vmatprep.subr.bf16.mxu1 %v476_v58 }
 0x119   : > { %733 = vmatpush3.bf16.msra.mxu1 %v476_v58 }
 0x11c   : > { %735 = vmatmul.mubr.msk.bf16.vlgmr.msra.gmra.mrb[0].mxu1 %vm515_vm1, %v822_v60 }
 0x1ef   : > { %v736_v0 = vpop.f32.mrb[0].mxu1 }
 0x1f0   : > { %v565_v1 = vadd.f32 %v736_v0, %v498_v63  ;;  %v556_v2 = vpop.f32.mrb[1].mxu1 }
 0x1f1   : > { %v557_v4 = vadd.f32 %v556_v2, %v488_v61  ;;  %v737_v5 = vpop.f32.mrb[2].mxu1 }
 0x1f2   : > { %573 = vst [vmem:[%s293_s27 + $0x10] sm:$0xff] %v565_v1  ;;  %v568_v6 = vadd.f32 %v737_v5, %v503_v3  ;;  %v559_v7 = vpop.f32.mrb[3].mxu1 }
 0x1f3   : > { %571 = vst [vmem:[%s293_s27] sm:$0xff] %v557_v4  ;;  %v560_v8 = vadd.f32 %v559_v7, %v493_v62 }
 0x1f4   : > { %574 = vst [vmem:[%s293_s27 + $0x18] sm:$0xff] %v568_v6 }
 0x1f5   : > { %572 = vst [vmem:[%s293_s27 + $0x8] sm:$0xff] %v560_v8 }
 0x1f6   : > { %836 = shalt.err (!%p833_p7)
}
 0x1f7   : > { %s837_s17 = scalar_lea.hbm %s1111_s10, 512  ;;  %s841_s9 = scalar_lea.hbm %s1170_s5, 2048 }
 0x1f8   : > { %p838_p10 = scmp.ne.s32.totalorder %s1111_s10, %s837_s17  ;;  %p842_p13 = scmp.lt.u32.totalorder %s1111_s10, %s1170_s5 }
 0x1f9   : > { %p843_p0 = scmp.lt.u32.totalorder %s841_s9, %s837_s17  ;;  %p845_p2 = scmp.lt.u32.totalorder %s837_s17, %s1111_s10 }
 0x1fa   : > { %p839_p11 = pnand %p838_p10, %p1014_p8 }
 0x1fb   : > { %p844_p1 = por %p843_p0, %p842_p13 }
 0x1fc   : > { %p840_p12 = pneg %p839_p11 }
 0x1fd   : > { %p846_p3 = por %p845_p2, %p844_p1 }
 0x1ff   : > { %p847_p4 = pnand %p846_p3, %p840_p12 }
 0x201   : > { %850 = shalt.err (!%p847_p4)
}
 0x202   : > { %s921_s13 = smov 128   ;;  %s922_s14 = smov 256  }
 0x203   : > { %s923_s15 = smov 8  }
 0x204   : > { %738 = dma.vmem_to_hbm [thread:$0]  (%p1014_p8), %s1106_s30, 512, %s1111_s10, %s576_s11, %s921_s13, %s922_s14, %s923_s15  }
 0x205 PF: > { %p744_p5 = scmp.ge.s32.totalorder %s917_s25, 2  ;;  %s605_s16 = sand.u32 1, %s889_s18  }
 0x206   : > { %s606_s17 = scalar_lea.sflag [#allocation4], %s605_s16 }
 0x207   : > { %p741_p6 = pnand %p744_p5, %p1018_p9 }
 0x209   : > { %884 = dma.done.wait (!%p741_p6), %s606_s17, 512  }
 0x20a   : > { %886 = vsyncadd (!%p741_p6), %s606_s17, 4294966784  ;;  %s18_s25 = sadd.s32 1, %s917_s25   ;;  %s1174_s18 = smov %s893_s19 }
 0x20b   : > { %p15_p7 = scmp.ge.s32.totalorder %s18_s25, 6   ;;  %s1175_s19 = smov %s897_s20 }
 0x20c   : > { %s1176_s20 = smov %s1026_s12  ;;  %s1177_s21 = smov %s909_s23 }
 0x20d   : > { %s1178_s22 = smov %s913_s24  ;;  %s1179_s23 = smov %s1182_s28 }
 0x20e   : > { %s1180_s24 = smov %s1186_s29  ;;  %17 = sbr.rel (!%p15_p7) target bundleno = 5 (0x5), region = 121 }
 0x215   :  { %611 = vsyncpa [#allocation4], 1 }
 0x216   :  { %613 = vsyncpa [#allocation4 + $0x1], 1 }

</bundles_post_ra>
